<compile_context>
chip_gen: v7x
topology: tpu7x:2x2x1
jax: 0.10.0
libtpu: 0.0.40
codegen_flags: <defaults>
</compile_context>

<pallas_src>
import math

import jax
import jax.numpy as jnp
from jax.experimental import pallas as pl
from jax.experimental.pallas import tpu as pltpu

LANE = 128


def _round_up(x, m):
    return (x + m - 1) // m * m


# --------------------------------------------------------------------------
# Kernel: relu(v@Wv' + a@Wa' + e@We' + b) @ W2 + b2   (two fused dense layers)
# --------------------------------------------------------------------------
def _mer_kernel(v_ref, a_ref, e_ref,
                wfv_ref, wfa_ref, wfe_ref, bf_ref,
                w2_ref, b2_ref, out_ref):
    # fused (V-proj -> out_proj -> fc -> fc1), split per modality, f32 accum
    h = jnp.dot(v_ref[...].astype(jnp.bfloat16), wfv_ref[...],
                preferred_element_type=jnp.float32)
    h = h + jnp.dot(a_ref[...].astype(jnp.bfloat16), wfa_ref[...],
                    preferred_element_type=jnp.float32)
    h = h + jnp.dot(e_ref[...].astype(jnp.bfloat16), wfe_ref[...],
                    preferred_element_type=jnp.float32)
    h = jnp.maximum(h + bf_ref[...], 0.0)          # fc1 bias + ReLU (f32 epilogue)

    # dropout(p=0.5): identity in eval/inference mode.
    # TODO(synk): training-mode stochastic dropout not implemented.

    # fc2 -> num_classes (lane-padded to 128)
    out_ref[...] = (jnp.dot(h.astype(jnp.bfloat16), w2_ref[...],
                            preferred_element_type=jnp.float32)
                    + b2_ref[...]).astype(out_ref.dtype)


# --------------------------------------------------------------------------
# Parameter fusion / padding (done once, outside the kernel, in f32)
# --------------------------------------------------------------------------
def fuse_params(params, modality_dims):
    """Constant-fold Wv@Wo@Wfc@W1 (f32), split by modality, cast weights bf16."""
    wv, bv = params["wv"], params["bv"]
    wo, bo = params["wo"], params["bo"]
    wfc, bfc = params["wfc"], params["bfc"]
    w1, b1 = params["w1"], params["b1"]
    w2, b2 = params["w2"], params["b2"]

    E = wv.shape[0]
    dv, da, de = modality_dims
    assert dv + da + de == E
    assert wv.shape == (E, E) and wo.shape == (E, E)
    assert wfc.shape[0] == E and w1.shape[0] == wfc.shape[1]
    assert w2.shape[0] == w1.shape[1]

    # seq_len == 1  =>  attention output == out_proj(V); no nonlinearity until
    # after fc1, so fold the entire chain  (E -> 256)  in f32.
    w_f = (wv @ wo @ wfc @ w1).astype(jnp.float32)            # (E, 256)
    b_f = (((bv @ wo + bo) @ wfc + bfc) @ w1 + b1)            # (1, 256)

    nc = w2.shape[1]
    ncp = _round_up(nc, LANE)
    w2p = jnp.pad(w2, ((0, 0), (0, ncp - nc)))
    b2p = jnp.pad(b2, ((0, 0), (0, ncp - nc)))

    return dict(
        wf_v=w_f[:dv].astype(jnp.bfloat16),
        wf_a=w_f[dv:dv + da].astype(jnp.bfloat16),
        wf_e=w_f[dv + da:].astype(jnp.bfloat16),
        bf=b_f.astype(jnp.float32),
        w2=w2p.astype(jnp.bfloat16),
        b2=b2p.astype(jnp.float32),
    )


# --------------------------------------------------------------------------
# Forward wrapper
# --------------------------------------------------------------------------
def multimodal_forward(video, audio, eeg, fused, *, num_classes):
    video = video.astype(jnp.float32)
    audio = audio.astype(jnp.float32)
    eeg = eeg.astype(jnp.float32)

    B = video.shape[0]
    dv, da, de = video.shape[1], audio.shape[1], eeg.shape[1]
    E = dv + da + de
    H = fused["bf"].shape[1]            # 256 (folded hidden)
    NCp = fused["w2"].shape[1]          # lane-padded num_classes

    # Batch tiling: 8-row aligned tiles; for larger B force >= 2 grid steps so
    # v7x's two TensorCores both get work (harmless on v5e/v6e).
    if B <= 32:
        TB = _round_up(B, 8)
    else:
        TB = min(512, _round_up(pl.cdiv(B, 2), 8))
    Bp = _round_up(B, TB)
    if Bp != B:
        pad = ((0, Bp - B), (0, 0))
        video = jnp.pad(video, pad)
        audio = jnp.pad(audio, pad)
        eeg = jnp.pad(eeg, pad)
    grid = (Bp // TB,)

    operands = (video, audio, eeg,
                fused["wf_v"], fused["wf_a"], fused["wf_e"], fused["bf"],
                fused["w2"], fused["b2"])

    flops = 2 * Bp * (E * H + H * NCp)
    bytes_accessed = (Bp * E * 4                 # activations (f32 in)
                      + (E * H + H * NCp) * 2    # bf16 weights
                      + (H + NCp) * 4            # f32 biases
                      + Bp * NCp * 4)            # f32 output

    out = pl.pallas_call(
        _mer_kernel,
        grid=grid,
        in_specs=[
            pl.BlockSpec((TB, dv), lambda i: (i, 0)),   # video: tiled over batch
            pl.BlockSpec((TB, da), lambda i: (i, 0)),   # audio
            pl.BlockSpec((TB, de), lambda i: (i, 0)),   # eeg
            pl.BlockSpec((dv, H), lambda i: (0, 0)),    # fused weight row-blocks
            pl.BlockSpec((da, H), lambda i: (0, 0)),
            pl.BlockSpec((de, H), lambda i: (0, 0)),
            pl.BlockSpec((1, H), lambda i: (0, 0)),     # fused bias
            pl.BlockSpec((H, NCp), lambda i: (0, 0)),   # fc2 weight
            pl.BlockSpec((1, NCp), lambda i: (0, 0)),   # fc2 bias
        ],
        out_specs=pl.BlockSpec((TB, NCp), lambda i: (i, 0)),
        out_shape=jax.ShapeDtypeStruct((Bp, NCp), jnp.float32),
        compiler_params=pltpu.CompilerParams(
            dimension_semantics=("parallel",)),
        cost_estimate=pl.CostEstimate(
            flops=flops, transcendentals=0, bytes_accessed=bytes_accessed),
    )(*operands)

    # strip batch padding and the lane padding of the class dimension
    return out[:B, :num_classes]


# --------------------------------------------------------------------------
# Synthetic parameters + plain-JAX reference (full attention math, eval mode)
# --------------------------------------------------------------------------
def init_params(key, embed_dim, num_classes):
    """Deterministic synthetic parameters (weights stored as (in, out))."""
    def linear(k, fan_in, fan_out):
        kw, kb = jax.random.split(k)
        w = jax.random.normal(kw, (fan_in, fan_out), jnp.float32) / math.sqrt(fan_in)
        b = 0.01 * jax.random.normal(kb, (1, fan_out), jnp.float32)
        return w, b

    ks = jax.random.split(key, 7)
    wq, bq = linear(ks[0], embed_dim, embed_dim)
    wk, bk = linear(ks[1], embed_dim, embed_dim)
    wv, bv = linear(ks[2], embed_dim, embed_dim)
    wo, bo = linear(ks[3], embed_dim, embed_dim)
    wfc, bfc = linear(ks[4], embed_dim, 512)
    w1, b1 = linear(ks[5], 512, 256)
    w2, b2 = linear(ks[6], 256, num_classes)
    return dict(wq=wq, bq=bq, wk=wk, bk=bk, wv=wv, bv=bv, wo=wo, bo=bo,
                wfc=wfc, bfc=bfc, w1=w1, b1=b1, w2=w2, b2=b2)


def reference_forward(video, audio, eeg, params, *, num_heads):
    """Mirrors the PyTorch forward (eval mode) with the full MHA math, f32."""
    x = jnp.concatenate([video, audio, eeg], axis=-1).astype(jnp.float32)
    B, E = x.shape
    d = E // num_heads
    q = x @ params["wq"] + params["bq"]
    k = x @ params["wk"] + params["bk"]
    v = x @ params["wv"] + params["bv"]
    qh = q.reshape(B, num_heads, d)
    kh = k.reshape(B, num_heads, d)
    vh = v.reshape(B, num_heads, d)
    scores = jnp.sum(qh * kh, -1) / math.sqrt(d)       # (B, H), seq_len = 1
    attn = jax.nn.softmax(scores[..., None], axis=-1)  # == 1.0
    ctx = (attn * vh).reshape(B, E)
    attn_out = ctx @ params["wo"] + params["bo"]
    h = attn_out @ params["wfc"] + params["bfc"]
    h = jnp.maximum(h @ params["w1"] + params["b1"], 0.0)
    return h @ params["w2"] + params["b2"]


if __name__ == "__main__":
    key = jax.random.PRNGKey(0)
    B = 2
    D_VIDEO, D_AUDIO, D_EEG = 8, 8, 16           # embed_dim = 32
    NUM_HEADS = 4
    NUM_CLASSES = 7
    EMBED_DIM = D_VIDEO + D_AUDIO + D_EEG

    kv, ka, ke, kp = jax.random.split(key, 4)
    video = jax.random.normal(kv, (B, D_VIDEO), jnp.float32)
    audio = jax.random.normal(ka, (B, D_AUDIO), jnp.float32)
    eeg = jax.random.normal(ke, (B, D_EEG), jnp.float32)

    params = init_params(kp, EMBED_DIM, NUM_CLASSES)
    fused = fuse_params(params, (D_VIDEO, D_AUDIO, D_EEG))   # one-time folding

    out = multimodal_forward(video, audio, eeg, fused, num_classes=NUM_CLASSES)
    out = jax.block_until_ready(out)

    ref = reference_forward(video, audio, eeg, params, num_heads=NUM_HEADS)
    assert out.shape == (B, NUM_CLASSES), out.shape
    # bf16 weights/activations in the kernel vs f32 reference -> looser tolerance
    assert jnp.allclose(out, ref, atol=5e-2, rtol=5e-2), (
        f"mismatch: max abs err {jnp.max(jnp.abs(out - ref))}")

    print("KERNEL_OK")
</pallas_src>

<mosaic_0001>
module attributes {stable_mosaic.version = 11 : i64} {
  func.func @_mer_kernel(%arg0: i32, %arg1: memref<8x8xf32, #tpu.memory_space<vmem>>, %arg2: memref<8x8xf32, #tpu.memory_space<vmem>>, %arg3: memref<8x16xf32, #tpu.memory_space<vmem>>, %arg4: memref<8x256xbf16, #tpu.memory_space<vmem>>, %arg5: memref<8x256xbf16, #tpu.memory_space<vmem>>, %arg6: memref<16x256xbf16, #tpu.memory_space<vmem>>, %arg7: memref<1x256xf32, #tpu.memory_space<vmem>>, %arg8: memref<256x128xbf16, #tpu.memory_space<vmem>>, %arg9: memref<1x128xf32, #tpu.memory_space<vmem>>, %arg10: memref<8x128xf32, #tpu.memory_space<vmem>>) attributes {dimension_semantics = [#tpu.dimension_semantics<parallel>], iteration_bounds = array<i64: 1>, scalar_prefetch = 0 : i64, scratch_operands = 0 : i64, tpu.core_type = #tpu.core_type<tc>, window_params = [{transform_indices = @transform_0, window_bounds = array<i64: 8, 8>}, {transform_indices = @transform_1, window_bounds = array<i64: 8, 8>}, {transform_indices = @transform_2, window_bounds = array<i64: 8, 16>}, {pipeline_mode = #tpu.pipeline_mode<synchronous>, transform_indices = @transform_3, window_bounds = array<i64: 8, 256>}, {pipeline_mode = #tpu.pipeline_mode<synchronous>, transform_indices = @transform_4, window_bounds = array<i64: 8, 256>}, {pipeline_mode = #tpu.pipeline_mode<synchronous>, transform_indices = @transform_5, window_bounds = array<i64: 16, 256>}, {pipeline_mode = #tpu.pipeline_mode<synchronous>, transform_indices = @transform_6, window_bounds = array<i64: 1, 256>}, {pipeline_mode = #tpu.pipeline_mode<synchronous>, transform_indices = @transform_7, window_bounds = array<i64: 256, 128>}, {pipeline_mode = #tpu.pipeline_mode<synchronous>, transform_indices = @transform_8, window_bounds = array<i64: 1, 128>}, {transform_indices = @transform_9, window_bounds = array<i64: 8, 128>}]} {
    %c0 = arith.constant 0 : index
    %c0_0 = arith.constant 0 : index
    %0 = vector.load %arg1[%c0, %c0_0] : memref<8x8xf32, #tpu.memory_space<vmem>>, vector<8x8xf32>
    %1 = arith.truncf %0 : vector<8x8xf32> to vector<8x8xbf16>
    %c0_1 = arith.constant 0 : index
    %c0_2 = arith.constant 0 : index
    %2 = vector.load %arg4[%c0_1, %c0_2] : memref<8x256xbf16, #tpu.memory_space<vmem>>, vector<8x256xbf16>
    %cst = arith.constant dense<0.000000e+00> : vector<8x256xf32>
    %3 = tpu.matmul %1, %2, %cst {dimension_numbers = #tpu.dot_dimension_numbers<[1], [0], [0], [1], [0, 0, 1, 1], [], []>} : vector<8x8xbf16>, vector<8x256xbf16>, vector<8x256xf32> -> vector<8x256xf32>
    %c0_3 = arith.constant 0 : index
    %c0_4 = arith.constant 0 : index
    %4 = vector.load %arg2[%c0_3, %c0_4] : memref<8x8xf32, #tpu.memory_space<vmem>>, vector<8x8xf32>
    %5 = arith.truncf %4 : vector<8x8xf32> to vector<8x8xbf16>
    %c0_5 = arith.constant 0 : index
    %c0_6 = arith.constant 0 : index
    %6 = vector.load %arg5[%c0_5, %c0_6] : memref<8x256xbf16, #tpu.memory_space<vmem>>, vector<8x256xbf16>
    %cst_7 = arith.constant dense<0.000000e+00> : vector<8x256xf32>
    %7 = tpu.matmul %5, %6, %cst_7 {dimension_numbers = #tpu.dot_dimension_numbers<[1], [0], [0], [1], [0, 0, 1, 1], [], []>} : vector<8x8xbf16>, vector<8x256xbf16>, vector<8x256xf32> -> vector<8x256xf32>
    %8 = arith.addf %3, %7 : vector<8x256xf32>
    %c0_8 = arith.constant 0 : index
    %c0_9 = arith.constant 0 : index
    %9 = vector.load %arg3[%c0_8, %c0_9] : memref<8x16xf32, #tpu.memory_space<vmem>>, vector<8x16xf32>
    %10 = arith.truncf %9 : vector<8x16xf32> to vector<8x16xbf16>
    %c0_10 = arith.constant 0 : index
    %c0_11 = arith.constant 0 : index
    %11 = vector.load %arg6[%c0_10, %c0_11] : memref<16x256xbf16, #tpu.memory_space<vmem>>, vector<16x256xbf16>
    %cst_12 = arith.constant dense<0.000000e+00> : vector<8x256xf32>
    %12 = tpu.matmul %10, %11, %cst_12 {dimension_numbers = #tpu.dot_dimension_numbers<[1], [0], [0], [1], [0, 0, 1, 1], [], []>} : vector<8x16xbf16>, vector<16x256xbf16>, vector<8x256xf32> -> vector<8x256xf32>
    %13 = arith.addf %8, %12 : vector<8x256xf32>
    %c0_13 = arith.constant 0 : index
    %c0_14 = arith.constant 0 : index
    %14 = vector.load %arg7[%c0_13, %c0_14] : memref<1x256xf32, #tpu.memory_space<vmem>>, vector<1x256xf32>
    %15 = vector.broadcast %14 : vector<1x256xf32> to vector<8x256xf32>
    %16 = arith.addf %13, %15 : vector<8x256xf32>
    %cst_15 = arith.constant 0.000000e+00 : f32
    %17 = vector.broadcast %cst_15 : f32 to vector<8x256xf32>
    %18 = arith.maximumf %16, %17 : vector<8x256xf32>
    %19 = arith.truncf %18 : vector<8x256xf32> to vector<8x256xbf16>
    %c0_16 = arith.constant 0 : index
    %c0_17 = arith.constant 0 : index
    %20 = vector.load %arg8[%c0_16, %c0_17] : memref<256x128xbf16, #tpu.memory_space<vmem>>, vector<256x128xbf16>
    %cst_18 = arith.constant dense<0.000000e+00> : vector<8x128xf32>
    %21 = tpu.matmul %19, %20, %cst_18 {dimension_numbers = #tpu.dot_dimension_numbers<[1], [0], [0], [1], [0, 0, 1, 1], [], []>} : vector<8x256xbf16>, vector<256x128xbf16>, vector<8x128xf32> -> vector<8x128xf32>
    %c0_19 = arith.constant 0 : index
    %c0_20 = arith.constant 0 : index
    %22 = vector.load %arg9[%c0_19, %c0_20] : memref<1x128xf32, #tpu.memory_space<vmem>>, vector<1x128xf32>
    %23 = vector.broadcast %22 : vector<1x128xf32> to vector<8x128xf32>
    %24 = arith.addf %21, %23 : vector<8x128xf32>
    %c0_21 = arith.constant 0 : index
    %c0_22 = arith.constant 0 : index
    %25 = vector.load %arg10[%c0_21, %c0_22] : memref<8x128xf32, #tpu.memory_space<vmem>>, vector<8x128xf32>
    tpu.vector_store %arg10[%c0_21, %c0_22], %24 {strides = array<i32>} : memref<8x128xf32, #tpu.memory_space<vmem>>, vector<8x128xf32>,
    return
  }
  func.func @transform_0(%arg0: i32) -> (i32, i32) {
    %c0_i32 = arith.constant 0 : i32
    %c0_i32_0 = arith.constant 0 : i32
    return %arg0, %c0_i32 : i32, i32
  }
  func.func @transform_1(%arg0: i32) -> (i32, i32) {
    %c0_i32 = arith.constant 0 : i32
    %c0_i32_0 = arith.constant 0 : i32
    return %arg0, %c0_i32 : i32, i32
  }
  func.func @transform_2(%arg0: i32) -> (i32, i32) {
    %c0_i32 = arith.constant 0 : i32
    %c0_i32_0 = arith.constant 0 : i32
    return %arg0, %c0_i32 : i32, i32
  }
  func.func @transform_3(%arg0: i32) -> (i32, i32) {
    %c0_i32 = arith.constant 0 : i32
    %c0_i32_0 = arith.constant 0 : i32
    %c0_i32_1 = arith.constant 0 : i32
    return %c0_i32, %c0_i32_0 : i32, i32
  }
  func.func @transform_4(%arg0: i32) -> (i32, i32) {
    %c0_i32 = arith.constant 0 : i32
    %c0_i32_0 = arith.constant 0 : i32
    %c0_i32_1 = arith.constant 0 : i32
    return %c0_i32, %c0_i32_0 : i32, i32
  }
  func.func @transform_5(%arg0: i32) -> (i32, i32) {
    %c0_i32 = arith.constant 0 : i32
    %c0_i32_0 = arith.constant 0 : i32
    %c0_i32_1 = arith.constant 0 : i32
    return %c0_i32, %c0_i32_0 : i32, i32
  }
  func.func @transform_6(%arg0: i32) -> (i32, i32) {
    %c0_i32 = arith.constant 0 : i32
    %c0_i32_0 = arith.constant 0 : i32
    %c0_i32_1 = arith.constant 0 : i32
    return %c0_i32, %c0_i32_0 : i32, i32
  }
  func.func @transform_7(%arg0: i32) -> (i32, i32) {
    %c0_i32 = arith.constant 0 : i32
    %c0_i32_0 = arith.constant 0 : i32
    %c0_i32_1 = arith.constant 0 : i32
    return %c0_i32, %c0_i32_0 : i32, i32
  }
  func.func @transform_8(%arg0: i32) -> (i32, i32) {
    %c0_i32 = arith.constant 0 : i32
    %c0_i32_0 = arith.constant 0 : i32
    %c0_i32_1 = arith.constant 0 : i32
    return %c0_i32, %c0_i32_0 : i32, i32
  }
  func.func @transform_9(%arg0: i32) -> (i32, i32) {
    %c0_i32 = arith.constant 0 : i32
    %c0_i32_0 = arith.constant 0 : i32
    return %arg0, %c0_i32 : i32, i32
  }
}

</mosaic_0001>

<bundles_post_ra>
// kernel: tpu_custom_call.1
= control target key start
LH: loop header
LB: loop body
LE: loop exit
PB: predicated region body
PF: predicated region fallthrough
CT: control target
= control target key end

     0   :  { %14 = vsyncpa [#allocation3], 0  ;;  %s911_s0 = inlined_call_operand.hbm [shape: f32[8,8], index: 0, kind: input, shape index: {}]   ;;  %s912_s1 = inlined_call_operand.hbm [shape: f32[8,8], index: 1, kind: input, shape index: {}]   ;;  %s913_s2 = inlined_call_operand.hbm [shape: f32[8,16], index: 2, kind: input, shape index: {}]   ;;  %s914_s3 = inlined_call_operand.hbm [shape: bf16[8,256], index: 3, kind: input, shape index: {}]   ;;  %s915_s4 = inlined_call_operand.hbm [shape: bf16[8,256], index: 4, kind: input, shape index: {}]   ;;  %s916_s5 = inlined_call_operand.vmem [shape: bf16[16,256], index: 5, kind: input, shape index: {}]   ;;  %s917_s6 = inlined_call_operand.vmem [shape: f32[1,256], index: 6, kind: input, shape index: {}]   ;;  %s918_s7 = inlined_call_operand.hbm [shape: bf16[256,128], index: 7, kind: input, shape index: {}]   ;;  %s919_s8 = inlined_call_operand.vmem [shape: f32[1,128], index: 8, kind: input, shape index: {}]   ;;  %s920_s9 = inlined_call_operand.hbm [shape: f32[8,128], index: 9, kind: output, shape index: {}]  }
   0x1   :  { %15 = vsyncpa [#allocation6], 0 }
   0x2   :  { %16 = vsyncpa [#allocation9], 0 }
   0x3   :  { %17 = vsyncpa [#allocation12], 0 }
   0x4   :  { %18 = vsyncpa [#allocation4], 0  ;;  %s744_s30 = smov [#allocation5]   ;;  %s745_s11 = smov [#allocation8]  }
   0x5   :  { %s35_s10 = sshll.u32 %s744_s30, 4  ;;  %s55_s12 = sshll.u32 %s745_s11, 4  ;;  %s36_s10 = int_to_ptr.vmem [resolvable:$true] %s35_s10  ;;  %s56_s12 = int_to_ptr.vmem [resolvable:$true] %s55_s12 }
   0x6   :  { %s580_s15 = scalar_lea.hbm %s912_s1, 128 }
   0x7   :  { %p581_p0 = scmp.ne.s32.totalorder %s912_s1, %s580_s15  ;;  %p584_p1 = scmp.lt.u32.totalorder %s580_s15, %s912_s1 }
   0x9   :  { %p586_p2 = pnand %p584_p1, %p581_p0 }
   0xb   :  { %589 = shalt.err (!%p586_p2)
}
   0xc   :  { %s590_s20 = scalar_lea.vmem %s36_s10, 128  ;;  %p595_p4 = scmp.lt.s32.totalorder %s36_s10, %s36_s10 }
   0xd   :  { %p591_p3 = scmp.ne.s32.totalorder %s36_s10, %s590_s20  ;;  %p596_p5 = scmp.lt.s32.totalorder %s590_s20, %s590_s20 }
   0xf   :  { %p597_p6 = por %p596_p5, %p595_p4 }
  0x11   :  { %p598_p7 = pnand %p597_p6, %p591_p3 }
  0x13   :  { %601 = shalt.err (!%p598_p7)
}
  0x14   :  { %38 = dma.hbm_to_vmem [thread:$0]  %s912_s1, 128, %s36_s10, [#allocation6]  }
  0x15   :  { %s602_s25 = scalar_lea.hbm %s914_s3, 128 }
  0x16   :  { %p603_p8 = scmp.ne.s32.totalorder %s914_s3, %s602_s25  ;;  %p606_p9 = scmp.lt.u32.totalorder %s602_s25, %s914_s3 }
  0x18   :  { %p608_p10 = pnand %p606_p9, %p603_p8 }
  0x1a   :  { %611 = shalt.err (!%p608_p10)
}
  0x1b   :  { %s612_s30 = scalar_lea.vmem %s56_s12, 128  ;;  %p617_p12 = scmp.lt.s32.totalorder %s56_s12, %s56_s12 }
  0x1c   :  { %p613_p11 = scmp.ne.s32.totalorder %s56_s12, %s612_s30  ;;  %p618_p13 = scmp.lt.s32.totalorder %s612_s30, %s612_s30 }
  0x1e   :  { %p619_p0 = por %p618_p13, %p617_p12 }
  0x20   :  { %p620_p1 = pnand %p619_p0, %p613_p11 }
  0x22   :  { %623 = shalt.err (!%p620_p1)
}
  0x23   :  { %58 = dma.hbm_to_vmem [thread:$0]  %s914_s3, 128, %s56_s12, [#allocation9]  }
  0x24   :  { %s746_s11 = smov [#allocation2]   ;;  %s747_s14 = smov [#allocation7]  }
  0x25   :  { %s25_s13 = sshll.u32 %s746_s11, 4  ;;  %s45_s15 = sshll.u32 %s747_s14, 4  ;;  %s26_s13 = int_to_ptr.vmem [resolvable:$true] %s25_s13  ;;  %s46_s15 = int_to_ptr.vmem [resolvable:$true] %s45_s15 }
  0x26   :  { %s624_s18 = scalar_lea.hbm %s911_s0, 128 }
  0x27   :  { %p625_p2 = scmp.ne.s32.totalorder %s911_s0, %s624_s18  ;;  %p628_p3 = scmp.lt.u32.totalorder %s624_s18, %s911_s0 }
  0x29   :  { %p630_p4 = pnand %p628_p3, %p625_p2 }
  0x2b   :  { %633 = shalt.err (!%p630_p4)
}
  0x2c   :  { %s634_s3 = scalar_lea.vmem %s26_s13, 128  ;;  %p639_p6 = scmp.lt.s32.totalorder %s26_s13, %s26_s13 }
  0x2d   :  { %p635_p5 = scmp.ne.s32.totalorder %s26_s13, %s634_s3  ;;  %p640_p7 = scmp.lt.s32.totalorder %s634_s3, %s634_s3 }
  0x2f   :  { %p641_p8 = por %p640_p7, %p639_p6 }
  0x31   :  { %p642_p9 = pnand %p641_p8, %p635_p5 }
  0x33   :  { %645 = shalt.err (!%p642_p9)
}
  0x34   :  { %28 = dma.hbm_to_vmem [thread:$0]  %s911_s0, 128, %s26_s13, [#allocation3]  }
  0x35   :  { %s646_s26 = scalar_lea.hbm %s913_s2, 128 }
  0x36   :  { %p647_p10 = scmp.ne.s32.totalorder %s913_s2, %s646_s26  ;;  %p650_p11 = scmp.lt.u32.totalorder %s646_s26, %s913_s2 }
  0x38   :  { %p652_p12 = pnand %p650_p11, %p647_p10 }
  0x3a   :  { %655 = shalt.err (!%p652_p12)
}
  0x3b   :  { %s656_s1 = scalar_lea.vmem %s46_s15, 128  ;;  %p661_p0 = scmp.lt.s32.totalorder %s46_s15, %s46_s15 }
  0x3c   :  { %p657_p13 = scmp.ne.s32.totalorder %s46_s15, %s656_s1  ;;  %p662_p1 = scmp.lt.s32.totalorder %s656_s1, %s656_s1 }
  0x3e   :  { %p663_p2 = por %p662_p1, %p661_p0 }
  0x40   :  { %p664_p3 = pnand %p663_p2, %p657_p13 }
  0x42   :  { %667 = shalt.err (!%p664_p3)
}
  0x43   :  { %48 = dma.hbm_to_vmem [thread:$0]  %s913_s2, 128, %s46_s15, [#allocation6]  }
  0x44   :  { %s748_s11 = smov [#allocation10]   ;;  %s749_s14 = smov [#allocation11]  }
  0x45   :  { %s65_s13 = sshll.u32 %s748_s11, 4  ;;  %s78_s16 = sshll.u32 %s749_s14, 4  ;;  %s66_s13 = int_to_ptr.vmem [resolvable:$true] %s65_s13  ;;  %s852_s16 = int_to_ptr.vmem [resolvable:$true] %s78_s16 }
  0x46   :  { %s668_s19 = scalar_lea.hbm %s915_s4, 128 }
  0x47   :  { %p669_p4 = scmp.ne.s32.totalorder %s915_s4, %s668_s19  ;;  %p672_p5 = scmp.lt.u32.totalorder %s668_s19, %s915_s4 }
  0x49   :  { %p674_p6 = pnand %p672_p5, %p669_p4 }
  0x4b   :  { %677 = shalt.err (!%p674_p6)
}
  0x4c   :  { %s678_s2 = scalar_lea.vmem %s66_s13, 128  ;;  %p683_p8 = scmp.lt.s32.totalorder %s66_s13, %s66_s13 }
  0x4d   :  { %p679_p7 = scmp.ne.s32.totalorder %s66_s13, %s678_s2  ;;  %p684_p9 = scmp.lt.s32.totalorder %s678_s2, %s678_s2 }
  0x4f   :  { %p685_p10 = por %p684_p9, %p683_p8 }
  0x51   :  { %p686_p11 = pnand %p685_p10, %p679_p7 }
  0x53   :  { %689 = shalt.err (!%p686_p11)
}
  0x54   :  { %68 = dma.hbm_to_vmem [thread:$0]  %s915_s4, 128, %s66_s13, [#allocation9]  }
  0x55   :  { %s690_s25 = scalar_lea.hbm %s918_s7, 2048 }
  0x56   :  { %p691_p12 = scmp.ne.s32.totalorder %s918_s7, %s690_s25  ;;  %p694_p13 = scmp.lt.u32.totalorder %s690_s25, %s918_s7 }
  0x58   :  { %p696_p0 = pnand %p694_p13, %p691_p12 }
  0x5a   :  { %699 = shalt.err (!%p696_p0)
}
  0x5b   :  { %s700_s30 = scalar_lea.vmem %s852_s16, 2048  ;;  %p705_p2 = scmp.lt.s32.totalorder %s852_s16, %s852_s16 }
  0x5c   :  { %p701_p1 = scmp.ne.s32.totalorder %s852_s16, %s700_s30  ;;  %p706_p3 = scmp.lt.s32.totalorder %s700_s30, %s700_s30 }
  0x5e   :  { %p707_p4 = por %p706_p3, %p705_p2 }
  0x60   :  { %p708_p5 = pnand %p707_p4, %p701_p1 }
  0x62   :  { %711 = shalt.err (!%p708_p5)
}
  0x63   :  { %s750_s4 = smov 64   ;;  %s751_s1 = smov 4  }
  0x64   :  { %84 = dma.hbm_to_vmem [thread:$0]  %s918_s7, 2048, %s852_s16, [#allocation12], %s750_s4, %s750_s4, %s751_s1  }
  0x65   :  { %734 = dma.done.wait [#allocation3], 128  }
  0x66   :  { %735 = vsyncadd [#allocation3], 4294967168 }
  0x67   :  { %736 = dma.done.wait [#allocation6], 256  }
  0x68   :  { %737 = vsyncadd [#allocation6], 4294967040 }
  0x69   :  { %738 = dma.done.wait [#allocation9], 256  }
  0x6a   :  { %739 = vsyncadd [#allocation9], 4294967040 }
  0x6b   :  { %740 = dma.done.wait [#allocation12], 2048  }
  0x6c   :  { %741 = vsyncadd [#allocation12], 4294965248  ;;  %v752_v0 = vmov 0   ;;  %v111_v1 = vld [vmem:[#allocation10] sm:$0xff]  ;;  %vm121_vm0 = vcmask 1043456   ;;  %v109_v2 = vld [vmem:[#allocation5] sm:$0xff]  ;;  %v287_v37 = vlaneseq }
  0x6d   :  { %160 = vmatprep.mubr.bf16.mxu0 %v752_v0  ;;  %v108_v3 = vld [vmem:[#allocation8] sm:$0xff]  ;;  %v498_v4 = vcombine.high %v111_v1, %v111_v1  ;;  %v497_v5 = vcombine.low %v111_v1, %v111_v1  ;;  %v110_v9 = vpack.c.bf16 %v109_v2, %v109_v2  ;;  %v564_v11 = vld [vmem:[#allocation11 + $0x40] sm:$0xff]   ;;  %vm117_vm1 = vcmask 64512   ;;  %v566_v14 = vld [vmem:[#allocation11 + $0x48] sm:$0xff]   ;;  %s753_s18 = smov [#allocation13]  }
  0x6e   :  { %v502_v6 = vcombine.high %v108_v3, %v108_v3  ;;  %v501_v7 = vcombine.low %v108_v3, %v108_v3  ;;  %v563_v10 = vld [vmem:[%s916_s5 + $0x4] ss:$8 sps:$4 sm:$0xff]   ;;  %v565_v12 = vld [vmem:[#allocation11] sm:$0xff]   ;;  %525 = vmatprep.subr.bf16.mxu1 %v564_v11  ;;  %v106_v15 = vld [vmem:[#allocation2] sm:$0xff]  ;;  %vm238_vm2 = vcmask 130048   ;;  %v288_v38 = vshrl.u32 %v287_v37, 7 }
  0x6f   :  { %499 = vmatprep.subr.msk.bf16.mxu0 %vm121_vm0, %v498_v4  ;;  %v123_v8 = vsel %vm121_vm0, %v497_v5, 0  ;;  %526 = vmatpush3.bf16.msra.mxu1 %v565_v12  ;;  %v561_v16 = vld [vmem:[%s916_s5] ss:$8 sps:$4 sm:$0xff]   ;;  %v107_v17 = vpack.c.bf16 %v106_v15, %v106_v15  ;;  %v570_v23 = vld [vmem:[#allocation11 + $0x58] sm:$0xff]   ;;  %v572_v25 = vld [vmem:[#allocation11 + $0x60] sm:$0xff]   ;;  %s485_s19 = sshll.u32 %s753_s18, 4  ;;  %s486_s19 = int_to_ptr.vmem [resolvable:$true] %s485_s19 }
  0x70   :  { %129 = vmatpush1.bf16.msra.mxu0 %v123_v8  ;;  %v178_v13 = vsel %vm121_vm0, %v501_v7, 0  ;;  %527 = vmatprep.subr.bf16.mxu1 %v566_v14  ;;  %v224_v18 = vld [vmem:[#allocation7] sm:$0xff]  ;;  %v568_v21 = vld [vmem:[#allocation11 + $0x50] sm:$0xff]   ;;  %v571_v24 = vld [vmem:[#allocation11 + $0x18] sm:$0xff]   ;;  %v289_v45 = vsub.s32 0, %v288_v38  ;;  %v293_v47 = vsub.s32 1, %v288_v38  ;;  %p717_p7 = scmp.lt.s32.totalorder %s486_s19, %s486_s19 }
  0x71   :  { %503 = vmatprep.subr.msk.bf16.mxu0 %vm121_vm0, %v502_v6  ;;  %v225_v19 = vpack.c.bf16 %v224_v18, %v224_v18  ;;  %v567_v20 = vld [vmem:[#allocation11 + $0x8] sm:$0xff]   ;;  %v569_v22 = vld [vmem:[#allocation11 + $0x10] sm:$0xff]   ;;  %v573_v26 = vld [vmem:[#allocation11 + $0x20] sm:$0xff]   ;;  %s712_s20 = scalar_lea.vmem %s486_s19, 128 }
  0x72   :  { %v574_v27 = vld [vmem:[#allocation11 + $0x68] sm:$0xff]   ;;  %v576_v29 = vld [vmem:[#allocation11 + $0x70] sm:$0xff]   ;;  %v578_v31 = vld [vmem:[#allocation11 + $0x78] sm:$0xff]   ;;  %p713_p6 = scmp.ne.s32.totalorder %s486_s19, %s712_s20  ;;  %p718_p8 = scmp.lt.s32.totalorder %s712_s20, %s712_s20 }
  0x73   :  { %500 = vmatmul.mubr.msk.bf16.vlgmr.msra.gmra.mrb[0].mxu0 %vm117_vm1, %v110_v9  ;;  %528 = vmatpush3.bf16.msra.mxu1 %v567_v20  ;;  %v575_v28 = vld [vmem:[#allocation11 + $0x28] sm:$0xff]   ;;  %v577_v30 = vld [vmem:[#allocation11 + $0x30] sm:$0xff]   ;;  %v579_v32 = vld [vmem:[#allocation11 + $0x38] sm:$0xff]  }
  0x74   :  { %184 = vmatpush1.bf16.msra.mxu0 %v178_v13  ;;  %215 = vmatprep.mubr.bf16.mxu0 %v752_v0  ;;  %v285_v46 = vld [vmem:[%s917_s6] sm:$0x3]  ;;  %p719_p9 = por %p718_p8, %p717_p7 }
  0x75   :  { %242 = vmatprep.subr.bf16.mxu0 %v563_v10  ;;  %529 = vmatprep.subr.bf16.mxu1 %v568_v21  ;;  %v290_v48 = vrot.slane %v285_v46, %v289_v45  ;;  %v294_v50 = vrot.slane %v285_v46, %v293_v47  ;;  %v508_v63 = vld [vmem:[%s919_s8] ss:$0 sm:$0xff] }
  0x76   :  { %p720_p10 = pnand %p719_p9, %p713_p6 }
  0x77   :  { %530 = vmatpush3.bf16.msra.mxu1 %v569_v22 }
  0x78   :  { %531 = vmatprep.subr.bf16.mxu1 %v570_v23 }
  0x7b   :  { %504 = vmatmul.mubr.msk.bf16.vlgmr.msra.gmra.mrb[4].mxu0 %vm117_vm1, %v107_v17  ;;  %532 = vmatpush3.bf16.msra.mxu1 %v571_v24 }
  0x7c   :  { %243 = vmatpush1.bf16.msra.mxu0 %v561_v16  ;;  %274 = vmatprep.mubr.bf16.mxu0 %v752_v0 }
  0x7d   :  { %533 = vmatprep.subr.bf16.mxu1 %v572_v25 }
  0x7f   :  { %534 = vmatpush3.bf16.msra.mxu1 %v573_v26 }
  0x80   :  { %535 = vmatprep.subr.bf16.mxu1 %v574_v27 }
  0x83   :  { %507 = vmatmul.mubr.msk.bf16.vlgmr.msra.gmra.mrb[8].mxu0 %vm238_vm2, %v225_v19  ;;  %536 = vmatpush3.bf16.msra.mxu1 %v575_v28 }
  0x84   :  { %537 = vmatprep.subr.bf16.mxu1 %v576_v29 }
  0x87   :  { %538 = vmatpush3.bf16.msra.mxu1 %v577_v30 }
  0x88   :  { %539 = vmatprep.subr.bf16.mxu1 %v578_v31 }
  0x8b   :  { %540 = vmatpush3.bf16.msra.mxu1 %v579_v32 }
 0x146   :  { %v162_v33 = vpop.f32.mrb[0].mxu0 }
 0x147   :  { %v164_v34 = vpop.f32.mrb[1].mxu0 }
 0x148   :  { %v166_v35 = vpop.f32.mrb[2].mxu0 }
 0x149   :  { %v167_v36 = vpop.f32.mrb[3].mxu0 }
 0x14e   :  { %v217_v39 = vpop.f32.mrb[4].mxu0 }
 0x14f   :  { %v218_v40 = vadd.f32 %v217_v39, %v162_v33  ;;  %v219_v41 = vpop.f32.mrb[5].mxu0 }
 0x150   :  { %v220_v42 = vadd.f32 %v219_v41, %v164_v34  ;;  %v221_v43 = vpop.f32.mrb[6].mxu0 }
 0x151   :  { %v222_v44 = vpop.f32.mrb[7].mxu0 }
 0x156   :  { %v276_v49 = vpop.f32.mrb[8].mxu0 }
 0x157   :  { %v283_v51 = vadd.f32 %v276_v49, %v218_v40  ;;  %v278_v52 = vpop.f32.mrb[9].mxu0 }
 0x158   :  { %v284_v53 = vadd.f32 %v278_v52, %v220_v42  ;;  %v280_v54 = vpop.f32.mrb[10].mxu0 }
 0x159   :  { %v297_v55 = vadd.f32 %v290_v48, %v283_v51  ;;  %v281_v56 = vpop.f32.mrb[11].mxu0 }
 0x15a   :  { %v298_v57 = vadd.f32 %v294_v50, %v284_v53 }
 0x15b   :  { %v299_v58 = vmax.f32 %v297_v55, 0.0 }
 0x15c   :  { %v300_v59 = vmax.f32 %v298_v57, 0.0 }
 0x15d   :  { %v301_v61 = vpack.c.bf16 %v299_v58, %v299_v58 }
 0x15e   :  { %v302_v60 = vpack.c.bf16 %v300_v59, %v300_v59 }
 0x160   :  { %470 = vmatprep.mubr.bf16.mxu1 %v302_v60 }
 0x161   :  { %471 = vmatmul.mubr.bf16.vlgmr.msra.gmra.mrb[0].mxu1 %v301_v61 }
 0x234   :  { %v541_v62 = vpop.f32.mrb[0].mxu1 }
 0x235   :  { %v542_v0 = vpop.f32.mrb[1].mxu1 }
 0x236   :  { %v543_v1 = vadd.f32 %v542_v0, %v541_v62  ;;  %v544_v2 = vpop.f32.mrb[2].mxu1 }
 0x237   :  { %v545_v3 = vpop.f32.mrb[3].mxu1 }
 0x238   :  { %v473_v4 = vadd.f32 %v543_v1, %v508_v63 }
 0x23a   :  { %478 = vst [vmem:[#allocation13] sm:$0xff] %v473_v4 }
 0x23b   :  { %723 = shalt.err (!%p720_p10)
}
 0x23c   :  { %s724_s8 = scalar_lea.hbm %s920_s9, 128 }
 0x23d   :  { %p725_p11 = scmp.ne.s32.totalorder %s920_s9, %s724_s8  ;;  %p728_p12 = scmp.lt.u32.totalorder %s724_s8, %s920_s9 }
 0x23f   :  { %p730_p13 = pnand %p728_p12, %p725_p11 }
 0x241   :  { %733 = shalt.err (!%p730_p13)
}
 0x242   :  { %488 = dma.vmem_to_hbm [thread:$0]  %s486_s19, 128, %s920_s9, [#allocation4]  }
 0x243   :  { %742 = dma.done.wait [#allocation4], 128  }
 0x244   :  { %743 = vsyncadd [#allocation4], 4294967168 }
 0x245   :  { %492 = vsyncpa [#allocation3], 1 }
 0x246   :  { %493 = vsyncpa [#allocation6], 1 }
 0x247   :  { %494 = vsyncpa [#allocation9], 1 }
 0x248   :  { %495 = vsyncpa [#allocation12], 1 }
 0x249   :  { %496 = vsyncpa [#allocation4], 1 }

</bundles_post_ra>
